<compile_context>
chip_gen: v6e
topology: v6e:2x2x1
jax: 0.10.0
libtpu: 0.0.40
codegen_flags: <defaults>
</compile_context>

<pallas_src>
import numpy as np

import jax
import jax.numpy as jnp
from jax.experimental import pallas as pl
from jax.experimental.pallas import tpu as pltpu


# ----------------------------------------------------------------------------
# Interpolation-matrix construction (host side, static shapes, numpy doubles —
# matches ATen's double-precision source-index computation).  Returns numpy f32.
# ----------------------------------------------------------------------------
def _interp_matrix(in_size, out_size, mode):
    """Returns M (out_size, in_size) such that y_out = M @ y_in along one axis."""
    m = np.zeros((out_size, in_size), np.float32)
    rows = np.arange(out_size)

    if mode == "nearest":
        # PyTorch 'nearest' (legacy): src = floor(dst * (in/out)).  Not 'nearest-exact'.
        src = np.floor(np.arange(out_size) * (in_size / out_size)).astype(np.int64)
        src = np.clip(src, 0, in_size - 1)
        m[rows, src] = 1.0
        return m

    # align_corners=True source coordinates
    if out_size > 1:
        coord = np.arange(out_size) * ((in_size - 1) / (out_size - 1))
    else:
        coord = np.zeros((out_size,))

    if mode == "bilinear":
        lo = np.clip(np.floor(coord).astype(np.int64), 0, in_size - 1)
        hi = np.clip(lo + 1, 0, in_size - 1)
        t = (coord - lo).astype(np.float64)
        np.add.at(m, (rows, lo), (1.0 - t).astype(np.float32))
        np.add.at(m, (rows, hi), t.astype(np.float32))
        return m

    if mode == "bicubic":
        # Keys cubic convolution kernel, a = -0.75 (PyTorch), border handled by index clamp.
        a = -0.75
        lo = np.floor(coord).astype(np.int64)
        t = coord - lo

        def cubic2(d):  # 1 < |d| < 2
            return a * d ** 3 - 5.0 * a * d ** 2 + 8.0 * a * d - 4.0 * a

        def cubic1(d):  # |d| <= 1
            return (a + 2.0) * d ** 3 - (a + 3.0) * d ** 2 + 1.0

        weights = [cubic2(t + 1.0), cubic1(t), cubic1(1.0 - t), cubic2(2.0 - t)]
        for k, wk in enumerate(weights):
            idx = np.clip(lo - 1 + k, 0, in_size - 1)
            np.add.at(m, (rows, idx), wk.astype(np.float32))
        return m

    raise ValueError(f"unsupported mode: {mode}")


# ----------------------------------------------------------------------------
# Block-batch chooser: largest divisor of N*C that (a) keeps the per-step working
# set under `budget_bytes`, (b) is <= cap (bounds static unroll), and (c) leaves a
# grid of length >= 2 when possible (keeps both v7x TensorCores busy).
# ----------------------------------------------------------------------------
def _choose_block_batch(nc, per_image_bytes, budget_bytes=4 << 20, cap=32):
    bmax = max(1, min(cap, budget_bytes // max(per_image_bytes, 1)))
    divisors = [d for d in range(1, nc + 1) if nc % d == 0 and d <= bmax]
    multi = [d for d in divisors if nc // d >= 2]
    if multi:
        return max(multi)
    return max(divisors) if divisors else 1


# ----------------------------------------------------------------------------
# Pallas kernel: for each image b in the block, out[b] = L @ x[b] @ R.
#   Width pass: one merged MXU matmul over the whole block.
#   Height pass: B statically-unrolled small MXU matmuls (B is small by construction).
# ----------------------------------------------------------------------------
def _resize_kernel(l_ref, r_ref, x_ref, o_ref):
    bsz, hin, win = x_ref.shape
    x = x_ref[...]                                    # native dtype, no up-cast pass
    xw = x.reshape(bsz * hin, win)                    # layout no-op when hin % 8 == 0
    t = jnp.dot(xw, r_ref[...],
                preferred_element_type=jnp.float32)   # (B*Hin, Wout), f32 accumulation
    if l_ref.dtype != jnp.float32:                    # nearest + half-precision path
        t = t.astype(l_ref.dtype)
    l = l_ref[...]
    for i in range(bsz):
        o_ref[i] = jnp.dot(
            l, t[i * hin:(i + 1) * hin, :],
            preferred_element_type=jnp.float32).astype(o_ref.dtype)


def upsample(x, output_size=None, interpolation="nearest"):
    """x: (N, C, H, W).  Matches Upsample.forward(x, output_size)."""
    n, c, h, w = x.shape
    if output_size is None:
        oh, ow = int(h * 2.0), int(w * 2.0)           # scale_factor = 2.0
    else:
        oh, ow = int(output_size[0]), int(output_size[1])

    mode = interpolation if interpolation in ("bilinear", "bicubic") else "nearest"

    orig_dtype = x.dtype
    if not jnp.issubdtype(x.dtype, jnp.floating):
        # TODO(synk): integer 'nearest' goes through the f32 matmul path (exact for |x| < 2^24),
        # then is cast back; PyTorch preserves the integer dtype natively.
        x = x.astype(jnp.float32)

    # Weight dtype: nearest weights are exact 0/1, so they can match a half-precision
    # input (keeps the MXU on the fast bf16 path).  Bilinear/bicubic weights stay f32
    # for accuracy; a bf16 input is promoted inside the dot, but the HBM traffic
    # (the real bottleneck) is still halved.
    if mode == "nearest" and x.dtype in (jnp.bfloat16, jnp.float16):
        wdtype = x.dtype
    else:
        wdtype = jnp.float32

    l_np = _interp_matrix(h, oh, mode)                        # (oh, h)
    r_np = np.ascontiguousarray(_interp_matrix(w, ow, mode).T)  # (w, ow), pre-transposed on host
    lmat = jnp.asarray(l_np, dtype=wdtype)
    rmat = jnp.asarray(r_np, dtype=wdtype)

    nc = n * c
    itemsize = jnp.dtype(x.dtype).itemsize
    wsize = jnp.dtype(wdtype).itemsize
    per_image_bytes = h * w * itemsize + oh * ow * itemsize + h * ow * 4
    bsz = _choose_block_batch(nc, per_image_bytes)
    grid_len = nc // bsz

    # VMEM budget: resident weights + double-buffered in/out blocks + intermediate headroom.
    weights_bytes = (oh * h + w * ow) * wsize
    block_in = bsz * h * w * itemsize
    block_out = bsz * oh * ow * itemsize
    block_mid = bsz * h * ow * 4
    vmem_limit = int(weights_bytes + 2 * (block_in + block_out + block_mid)) + (4 << 20)
    vmem_limit = int(min(48 << 20, max(16 << 20, vmem_limit)))   # safe on v5e/v6e/v7x

    # Cost hint so XLA can overlap this mem-bound call with surrounding ops.
    flops = 2 * nc * (h * w * ow + oh * h * ow)
    bytes_accessed = nc * (h * w + oh * ow) * itemsize + weights_bytes
    cost = pl.CostEstimate(flops=flops, transcendentals=0, bytes_accessed=bytes_accessed)

    xf = x.reshape(nc, h, w)
    out = pl.pallas_call(
        _resize_kernel,
        out_shape=jax.ShapeDtypeStruct((nc, oh, ow), x.dtype),
        grid=(grid_len,),
        in_specs=[
            pl.BlockSpec((oh, h), lambda i: (0, 0)),          # L, resident across grid
            pl.BlockSpec((w, ow), lambda i: (0, 0)),          # R, resident across grid
            pl.BlockSpec((bsz, h, w), lambda i: (i, 0, 0)),   # B images per step
        ],
        out_specs=pl.BlockSpec((bsz, oh, ow), lambda i: (i, 0, 0)),
        compiler_params=pltpu.CompilerParams(
            dimension_semantics=("parallel",),
            vmem_limit_bytes=vmem_limit,
        ),
        cost_estimate=cost,
    )(lmat, rmat, xf)
    out = out.reshape(n, c, oh, ow)
    if out.dtype != orig_dtype:
        out = out.astype(orig_dtype)
    return out


class Upsample:
    """Mirror of the PyTorch module (mode fixed at construction)."""

    def __init__(self, interpolation="nearest"):
        self.type = interpolation

    def __call__(self, x, output_size=None):
        return upsample(x, output_size, self.type)


# ----------------------------------------------------------------------------
# Pure-JAX / numpy references for correctness checks
# ----------------------------------------------------------------------------
def ref_nearest(x, oh, ow):
    n, c, h, w = x.shape
    ri = np.minimum(np.floor(np.arange(oh) * (h / oh)).astype(np.int64), h - 1)
    ci = np.minimum(np.floor(np.arange(ow) * (w / ow)).astype(np.int64), w - 1)
    return x[:, :, ri, :][:, :, :, ci]


def ref_bilinear_align_corners(x, oh, ow):
    n, c, h, w = x.shape
    yc = np.arange(oh) * ((h - 1) / (oh - 1)) if oh > 1 else np.zeros((oh,))
    xc = np.arange(ow) * ((w - 1) / (ow - 1)) if ow > 1 else np.zeros((ow,))
    y0 = np.clip(np.floor(yc).astype(np.int64), 0, h - 1)
    x0 = np.clip(np.floor(xc).astype(np.int64), 0, w - 1)
    y1 = np.clip(y0 + 1, 0, h - 1)
    x1 = np.clip(x0 + 1, 0, w - 1)
    ty = jnp.asarray((yc - y0).astype(np.float32))[None, None, :, None]
    tx = jnp.asarray((xc - x0).astype(np.float32))[None, None, None, :]

    def gather(yi, xi):
        return x[:, :, yi, :][:, :, :, xi]

    top = gather(y0, x0) * (1.0 - tx) + gather(y0, x1) * tx
    bot = gather(y1, x0) * (1.0 - tx) + gather(y1, x1) * tx
    return top * (1.0 - ty) + bot * ty


def ref_matrix_resize(x, oh, ow, mode):
    """Pure-JAX einsum using the same separable matrices (checks the Pallas path)."""
    n, c, h, w = x.shape
    lmat = jnp.asarray(_interp_matrix(h, oh, mode), jnp.float32)
    rmat = jnp.asarray(np.ascontiguousarray(_interp_matrix(w, ow, mode).T), jnp.float32)
    y = jnp.einsum("oh,nchw,wp->ncop", lmat, x.astype(jnp.float32), rmat)
    return y.astype(x.dtype)


# ----------------------------------------------------------------------------
if __name__ == "__main__":
    N, C, H, W = 2, 4, 16, 16
    key = jax.random.PRNGKey(0)
    x = jax.random.normal(key, (N, C, H, W), jnp.float32)

    # 1) default path: output_size=None -> scale_factor=2.0, mode='nearest'
    up_nearest = Upsample("nearest")
    out_n = jax.block_until_ready(up_nearest(x))
    assert out_n.shape == (N, C, 2 * H, 2 * W), out_n.shape
    ref_n = ref_nearest(x, 2 * H, 2 * W)
    err_n = float(jnp.max(jnp.abs(out_n - ref_n)))
    assert jnp.allclose(out_n, ref_n, rtol=1e-5, atol=1e-5), err_n

    # 2) bilinear, align_corners=True, scale_factor=2.0
    up_bilinear = Upsample("bilinear")
    out_b = jax.block_until_ready(up_bilinear(x))
    ref_b = ref_bilinear_align_corners(x, 2 * H, 2 * W)
    err_b = float(jnp.max(jnp.abs(out_b - ref_b)))
    assert jnp.allclose(out_b, ref_b, rtol=1e-5, atol=1e-5), err_b

    # 3) bicubic, align_corners=True, scale_factor=2.0 (kernel vs pure-JAX matrix path)
    up_bicubic = Upsample("bicubic")
    out_c = jax.block_until_ready(up_bicubic(x))
    ref_c = ref_matrix_resize(x, 2 * H, 2 * W, "bicubic")
    err_c = float(jnp.max(jnp.abs(out_c - ref_c)))
    assert jnp.allclose(out_c, ref_c, rtol=1e-4, atol=1e-4), err_c

    # 4) explicit output_size path, nearest
    out_s = jax.block_until_ready(up_nearest(x, output_size=(24, 20)))
    assert out_s.shape == (N, C, 24, 20), out_s.shape
    ref_s = ref_nearest(x, 24, 20)
    err_s = float(jnp.max(jnp.abs(out_s - ref_s)))
    assert jnp.allclose(out_s, ref_s, rtol=1e-5, atol=1e-5), err_s

    print("KERNEL_OK")
</pallas_src>

<mosaic_0001>
module attributes {stable_mosaic.version = 11 : i64} {
  func.func @_resize_kernel(%arg0: i32, %arg1: memref<32x16xf32, #tpu.memory_space<vmem>>, %arg2: memref<16x32xf32, #tpu.memory_space<vmem>>, %arg3: memref<4x16x16xf32, #tpu.memory_space<vmem>>, %arg4: memref<4x32x32xf32, #tpu.memory_space<vmem>>) attributes {dimension_semantics = [#tpu.dimension_semantics<parallel>], iteration_bounds = array<i64: 2>, scalar_prefetch = 0 : i64, scratch_operands = 0 : i64, tpu.core_type = #tpu.core_type<tc>, window_params = [{pipeline_mode = #tpu.pipeline_mode<synchronous>, transform_indices = @transform_0, window_bounds = array<i64: 32, 16>}, {pipeline_mode = #tpu.pipeline_mode<synchronous>, transform_indices = @transform_1, window_bounds = array<i64: 16, 32>}, {transform_indices = @transform_2, window_bounds = array<i64: 4, 16, 16>}, {transform_indices = @transform_3, window_bounds = array<i64: 4, 32, 32>}]} {
    %c0 = arith.constant 0 : index
    %c0_0 = arith.constant 0 : index
    %c0_1 = arith.constant 0 : index
    %0 = vector.load %arg3[%c0, %c0_0, %c0_1] : memref<4x16x16xf32, #tpu.memory_space<vmem>>, vector<4x16x16xf32>
    %1 = vector.shape_cast %0 : vector<4x16x16xf32> to vector<64x16xf32>
    %c0_2 = arith.constant 0 : index
    %c0_3 = arith.constant 0 : index
    %2 = vector.load %arg2[%c0_2, %c0_3] : memref<16x32xf32, #tpu.memory_space<vmem>>, vector<16x32xf32>
    %cst = arith.constant dense<0.000000e+00> : vector<64x32xf32>
    %3 = tpu.matmul %1, %2, %cst {dimension_numbers = #tpu.dot_dimension_numbers<[1], [0], [0], [1], [0, 0, 1, 1], [], []>} : vector<64x16xf32>, vector<16x32xf32>, vector<64x32xf32> -> vector<64x32xf32>
    %c0_4 = arith.constant 0 : index
    %c0_5 = arith.constant 0 : index
    %4 = vector.load %arg1[%c0_4, %c0_5] : memref<32x16xf32, #tpu.memory_space<vmem>>, vector<32x16xf32>
    %5 = vector.extract_strided_slice %3 {offsets = [0, 0], sizes = [16, 32], strides = [1, 1]} : vector<64x32xf32> to vector<16x32xf32>
    %cst_6 = arith.constant dense<0.000000e+00> : vector<32x32xf32>
    %6 = tpu.matmul %4, %5, %cst_6 {dimension_numbers = #tpu.dot_dimension_numbers<[1], [0], [0], [1], [0, 0, 1, 1], [], []>} : vector<32x16xf32>, vector<16x32xf32>, vector<32x32xf32> -> vector<32x32xf32>
    %c0_7 = arith.constant 0 : index
    %c0_8 = arith.constant 0 : index
    %c0_9 = arith.constant 0 : index
    %7 = vector.load %arg4[%c0_7, %c0_8, %c0_9] : memref<4x32x32xf32, #tpu.memory_space<vmem>>, vector<1x32x32xf32>
    %8 = vector.shape_cast %7 : vector<1x32x32xf32> to vector<32x32xf32>
    %9 = vector.shape_cast %6 : vector<32x32xf32> to vector<1x32x32xf32>
    tpu.vector_store %arg4[%c0_7, %c0_8, %c0_9], %9 {strides = array<i32>} : memref<4x32x32xf32, #tpu.memory_space<vmem>>, vector<1x32x32xf32>,
    %10 = vector.extract_strided_slice %3 {offsets = [16, 0], sizes = [16, 32], strides = [1, 1]} : vector<64x32xf32> to vector<16x32xf32>
    %cst_10 = arith.constant dense<0.000000e+00> : vector<32x32xf32>
    %11 = tpu.matmul %4, %10, %cst_10 {dimension_numbers = #tpu.dot_dimension_numbers<[1], [0], [0], [1], [0, 0, 1, 1], [], []>} : vector<32x16xf32>, vector<16x32xf32>, vector<32x32xf32> -> vector<32x32xf32>
    %c1 = arith.constant 1 : index
    %c0_11 = arith.constant 0 : index
    %c0_12 = arith.constant 0 : index
    %12 = vector.load %arg4[%c1, %c0_11, %c0_12] : memref<4x32x32xf32, #tpu.memory_space<vmem>>, vector<1x32x32xf32>
    %13 = vector.shape_cast %12 : vector<1x32x32xf32> to vector<32x32xf32>
    %14 = vector.shape_cast %11 : vector<32x32xf32> to vector<1x32x32xf32>
    tpu.vector_store %arg4[%c1, %c0_11, %c0_12], %14 {strides = array<i32>} : memref<4x32x32xf32, #tpu.memory_space<vmem>>, vector<1x32x32xf32>,
    %15 = vector.extract_strided_slice %3 {offsets = [32, 0], sizes = [16, 32], strides = [1, 1]} : vector<64x32xf32> to vector<16x32xf32>
    %cst_13 = arith.constant dense<0.000000e+00> : vector<32x32xf32>
    %16 = tpu.matmul %4, %15, %cst_13 {dimension_numbers = #tpu.dot_dimension_numbers<[1], [0], [0], [1], [0, 0, 1, 1], [], []>} : vector<32x16xf32>, vector<16x32xf32>, vector<32x32xf32> -> vector<32x32xf32>
    %c2 = arith.constant 2 : index
    %c0_14 = arith.constant 0 : index
    %c0_15 = arith.constant 0 : index
    %17 = vector.load %arg4[%c2, %c0_14, %c0_15] : memref<4x32x32xf32, #tpu.memory_space<vmem>>, vector<1x32x32xf32>
    %18 = vector.shape_cast %17 : vector<1x32x32xf32> to vector<32x32xf32>
    %19 = vector.shape_cast %16 : vector<32x32xf32> to vector<1x32x32xf32>
    tpu.vector_store %arg4[%c2, %c0_14, %c0_15], %19 {strides = array<i32>} : memref<4x32x32xf32, #tpu.memory_space<vmem>>, vector<1x32x32xf32>,
    %20 = vector.extract_strided_slice %3 {offsets = [48, 0], sizes = [16, 32], strides = [1, 1]} : vector<64x32xf32> to vector<16x32xf32>
    %cst_16 = arith.constant dense<0.000000e+00> : vector<32x32xf32>
    %21 = tpu.matmul %4, %20, %cst_16 {dimension_numbers = #tpu.dot_dimension_numbers<[1], [0], [0], [1], [0, 0, 1, 1], [], []>} : vector<32x16xf32>, vector<16x32xf32>, vector<32x32xf32> -> vector<32x32xf32>
    %c3 = arith.constant 3 : index
    %c0_17 = arith.constant 0 : index
    %c0_18 = arith.constant 0 : index
    %22 = vector.load %arg4[%c3, %c0_17, %c0_18] : memref<4x32x32xf32, #tpu.memory_space<vmem>>, vector<1x32x32xf32>
    %23 = vector.shape_cast %22 : vector<1x32x32xf32> to vector<32x32xf32>
    %24 = vector.shape_cast %21 : vector<32x32xf32> to vector<1x32x32xf32>
    tpu.vector_store %arg4[%c3, %c0_17, %c0_18], %24 {strides = array<i32>} : memref<4x32x32xf32, #tpu.memory_space<vmem>>, vector<1x32x32xf32>,
    return
  }
  func.func @transform_0(%arg0: i32) -> (i32, i32) {
    %c0_i32 = arith.constant 0 : i32
    %c0_i32_0 = arith.constant 0 : i32
    %c0_i32_1 = arith.constant 0 : i32
    return %c0_i32, %c0_i32_0 : i32, i32
  }
  func.func @transform_1(%arg0: i32) -> (i32, i32) {
    %c0_i32 = arith.constant 0 : i32
    %c0_i32_0 = arith.constant 0 : i32
    %c0_i32_1 = arith.constant 0 : i32
    return %c0_i32, %c0_i32_0 : i32, i32
  }
  func.func @transform_2(%arg0: i32) -> (i32, i32, i32) {
    %c0_i32 = arith.constant 0 : i32
    %c0_i32_0 = arith.constant 0 : i32
    %c0_i32_1 = arith.constant 0 : i32
    return %arg0, %c0_i32, %c0_i32_0 : i32, i32, i32
  }
  func.func @transform_3(%arg0: i32) -> (i32, i32, i32) {
    %c0_i32 = arith.constant 0 : i32
    %c0_i32_0 = arith.constant 0 : i32
    %c0_i32_1 = arith.constant 0 : i32
    return %arg0, %c0_i32, %c0_i32_0 : i32, i32, i32
  }
}

</mosaic_0001>

<bundles_post_ra>
// kernel: tpu_custom_call.1
= control target key start
LH: loop header
LB: loop body
LE: loop exit
PB: predicated region body
PF: predicated region fallthrough
CT: control target
= control target key end

     0   :  { %8 = vsyncpa [#allocation3], 0  ;;  %s1344_s0 = inlined_call_operand.vmem [shape: f32[32,16], index: 0, kind: input, shape index: {}]   ;;  %s1345_s1 = inlined_call_operand.vmem [shape: f32[16,32], index: 1, kind: input, shape index: {}]   ;;  %s1346_s2 = inlined_call_operand.hbm [shape: f32[8,16,16], index: 2, kind: input, shape index: {}]   ;;  %s1347_s3 = inlined_call_operand.hbm [shape: f32[8,32,32], index: 3, kind: output, shape index: {}]  }
   0x1   :  { %10 = vsyncpa [#allocation3 + $0x1], 0 }
   0x2   :  { %11 = vsyncpa [#allocation4], 0 }
   0x3   :  { %13 = vsyncpa [#allocation4 + $0x1], 0  ;;  %s1112_s12 = smov 0   ;;  %s1114_s13 = smov 0  }
   0x4   :  { %s1116_s14 = smov 0   ;;  %s1118_s15 = smov 0  }
   0x5 LB: > { %s1133_s16 = sadd.s32 4294967295, %s1084_s15   ;;  %s796_s17 = sadd.s32 4294967294, %s1084_s15   ;;  %s1084_s15 = sphi %s1118_s15, %s1362_s15   ;;  %s1080_s14 = sphi %s1116_s14, %s1361_s14   ;;  %s1076_s13 = sphi %s1114_s13, %s1360_s13   ;;  %s1072_s12 = sphi %s1112_s12, %s1359_s12  }
   0x6   : > { %s1137_s18 = sadd.s32 1, %s1084_s15   ;;  %s68_s19 = sadd.s32 1, %s1080_s14 }
   0x7   : > { %s65_s20 = ssub.s32 %s1084_s15, %s1137_s18  ;;  %p75_p0 = scmp.ne.s32.totalorder %s1080_s14, %s1076_s13 }
   0x8   : > { %p66_p1 = scmp.eq.s32.totalorder %s65_s20, 0  ;;  %p76_p2 = scmp.eq.s32.totalorder %s1084_s15, 0 }
   0x9   : > { %p81_p3 = scmp.ne.s32.totalorder %s1076_s13, %s1072_s12  ;;  %p82_p4 = scmp.eq.s32.totalorder %s1133_s16, 0 }
   0xa   : > { %s1149_s21 = scalar_select %p66_p1, %s1080_s14, %s68_s19  }
   0xb   : > { %p1151_p5 = por %p76_p2, %p75_p0  ;;  %p1155_p6 = por %p82_p4, %p81_p3 }
   0xc   : > { %p105_p7 = scmp.eq.s32.totalorder %s1133_s16, 1  ;;  %p111_p8 = scmp.eq.s32.totalorder %s796_s17, 1 }
   0xd   : > { %s1351_s23 = scalar_select %p1155_p6, 1, 0 }
   0xe   : > { %p954_p10 = scmp.lt.s32.totalorder %s1084_s15, 2  ;;  %p1162_p11 = por %p105_p7, %p75_p0 }
   0xf   : > { %p1166_p12 = por %p111_p8, %p81_p3  ;;  %s137_s26 = sand.u32 1, %s1080_s14  }
  0x10   : > { %s1352_s24 = scalar_select %p1162_p11, 1, 0 }
  0x11   : > { %s1353_s25 = scalar_select %p1166_p12, 1, 0 }
  0x12   : > { %s849_s27 = sshll.u32 %s1084_s15, 10  ;;  %s799_s28 = sshll.u32 %s137_s26, 6 }
  0x13   : > { %s1175_s4 = scalar_lea.hbm %s1346_s2, %s849_s27  ;;  %s141_s5 = scalar_lea.vmem [#allocation2], %s799_s28 }
  0x14   : > { %s149_s6 = sshll.u32 %s141_s5, 4  ;;  %p1179_p13 = pnand %p954_p10, %p1151_p5  ;;  %s1183_s6 = int_to_ptr.vmem [resolvable:$true] %s149_s6 }
  0x15   : > { %s1185_s8 = scalar_lea.sflag [#allocation3], %s137_s26  ;;  %s992_s9 = scalar_lea.hbm %s1175_s4, 1024 }
  0x16   : > { %p993_p0 = scmp.ne.s32.totalorder %s1175_s4, %s992_s9  ;;  %p994_p1 = pneg %p1179_p13 }
  0x17   : > { %s997_s17 = scalar_lea.hbm %s1346_s2, 2048  ;;  %p998_p4 = scmp.lt.s32.totalorder %s1175_s4, %s1346_s2 }
  0x18   : > { %p995_p2 = pnand %p994_p1, %p993_p0  ;;  %p999_p5 = scmp.lt.s32.totalorder %s997_s17, %s992_s9 }
  0x1a   : > { %p996_p3 = pneg %p995_p2  ;;  %p1000_p7 = por %p999_p5, %p998_p4 }
  0x1c   : > { %p1001_p8 = pnand %p1000_p7, %p996_p3 }
  0x1e   : > { %1004 = shalt.err (!%p1001_p8)
}
  0x1f   : > { %s1005_s22 = scalar_lea.vmem %s1183_s6, 1024  ;;  %s1086_s26 = smov [#allocation2]  }
  0x20   : > { %p1006_p10 = scmp.ne.s32.totalorder %s1183_s6, %s1005_s22  ;;  %s1010_s27 = sshll.u32 %s1086_s26, 4  ;;  %s1011_s27 = int_to_ptr.vmem [resolvable:$false] %s1010_s27 }
  0x21   : > { %s1012_s28 = scalar_lea.vmem %s1011_s27, 2048  ;;  %p1013_p2 = scmp.lt.s32.totalorder %s1183_s6, %s1011_s27 }
  0x22   : > { %p1008_p9 = pnand %p1006_p10, %p994_p1  ;;  %p1014_p12 = scmp.lt.s32.totalorder %s1012_s28, %s1005_s22 }
  0x24   : > { %p1009_p0 = pneg %p1008_p9  ;;  %p1015_p11 = por %p1014_p12, %p1013_p2 }
  0x26   : > { %p1016_p6 = pnand %p1015_p11, %p1009_p0 }
  0x28   : > { %1019 = shalt.err (!%p1016_p6)
}
  0x29   : > { %s1087_s29 = smov 128   ;;  %s1088_s30 = smov 8  }
  0x2a   : > { %949 = dma.hbm_to_vmem [thread:$0]  (!%p1179_p13), %s1175_s4, 1024, %s1183_s6, %s1185_s8, %s1087_s29, %s1087_s29, %s1088_s30  }
  0x2b   : > { %p803_p9 = scmp.ge.s32.totalorder %s1084_s15, 1  ;;  %p157_p1 = scmp.lt.s32.totalorder %s1084_s15, 3 }
  0x2d   : > { %p158_p3 = pnand %p803_p9, %p157_p1 }
  0x2e   : > { %s1209_s5 = sand.u32 (!%p158_p3), 1, %s1076_s13   ;;  %p1355_p6 = scmp.ne.s32.totalorder (!%p158_p3), %s1351_s23, 0 }
  0x2f   : > { %161 = sbr.rel (%p158_p3) target bundleno = 484 (0x1e4), region = 32  ;;  %s804_s9 = sshll.u32 (!%p158_p3), %s1209_s5, 6 }
  0x30   : > { %s164_s10 = scalar_lea.sflag (!%p158_p3), [#allocation3], %s1209_s5  ;;  %s167_s11 = scalar_lea.vmem (!%p158_p3), [#allocation2], %s804_s9 }
  0x34   : > { %1063 = dma.done.wait (%p1355_p6), %s164_s10, 1024  }
  0x35   : > { %1065 = vsyncadd (%p1355_p6), %s164_s10, 4294966272  ;;  %vm202_vm0 = vcmask 130048   ;;  %v201_v0 = vld [vmem:[%s1345_s1 + $0x8] sm:$0xff]  ;;  %v200_v1 = vld [vmem:[%s1345_s1] sm:$0xff]  ;;  %s805_s29 = sshll.u32 %s1209_s5, 7  ;;  %vm433_vm1 = vcmask 261120  }
  0x36   : > { %v192_v2 = vld [vmem:[%s167_s11] sm:$0xff]  ;;  %886 = vmatprep.subr.mxu0 %v201_v0  ;;  %v193_v3 = vld [vmem:[%s167_s11 + $0x8] sm:$0xff]  ;;  %v194_v4 = vld [vmem:[%s167_s11 + $0x10] sm:$0xff]  ;;  %s1260_s30 = scalar_lea.vmem [#allocation5], %s805_s29  ;;  %s851_s9 = sshll.u32 %s1133_s16, 11 }
  0x37   : > { %890 = vmatprep.mubr.msk.f32.mxu0 %vm202_vm0, %v192_v2  ;;  %887 = vmatpush3.msra.mxu0 %v201_v0  ;;  %v195_v5 = vld [vmem:[%s167_s11 + $0x18] sm:$0xff]  ;;  %v196_v6 = vld [vmem:[%s167_s11 + $0x20] sm:$0xff]  ;;  %v197_v7 = vld [vmem:[%s167_s11 + $0x28] sm:$0xff]  ;;  %s723_s10 = sshll.u32 %s1260_s30, 4  ;;  %s1295_s6 = scalar_lea.hbm %s1347_s3, %s851_s9  ;;  %s1297_s10 = int_to_ptr.vmem [resolvable:$true] %s723_s10 }
  0x38   : > { %888 = vmatprep.subr.mxu0 %v200_v1  ;;  %v198_v8 = vld [vmem:[%s167_s11 + $0x30] sm:$0xff]  ;;  %v199_v9 = vld [vmem:[%s167_s11 + $0x38] sm:$0xff]  ;;  %v332_v10 = vld [vmem:[%s1344_s0] sm:$0xff]  ;;  %s709_s16 = scalar_lea.sflag [#allocation4], %s1209_s5  ;;  %s1020_s7 = scalar_lea.vmem %s1297_s10, 2048 }
  0x39   : > { %889 = vmatpush3.msra.mxu0 %v200_v1  ;;  %906 = vmatprep.mubr.msk.f32.mxu1 %vm202_vm0, %v332_v10  ;;  %v333_v13 = vld [vmem:[%s1344_s0 + $0x8] sm:$0xff]  ;;  %v334_v14 = vld [vmem:[%s1344_s0 + $0x10] sm:$0xff]  ;;  %v335_v17 = vld [vmem:[%s1344_s0 + $0x18] sm:$0xff]  ;;  %p1021_p11 = scmp.ne.s32.totalorder %s1297_s10, %s1020_s7  ;;  %p1356_p12 = scmp.ne.s32.totalorder %s1352_s24, 0 }
  0x3a   : > { %891 = vmatmul.mubr.msk.f32.vlgmr.msra.gmra.mxu0 %vm202_vm0, %v193_v3  ;;  %s1089_s8 = smov [#allocation5]  }
  0x3b   : > { %893 = vmatprep.mubr.msk.f32.mxu0 %vm202_vm0, %v194_v4  ;;  %p1022_p13 = pnand %p1021_p11, %p1356_p12  ;;  %s1024_s23 = sshll.u32 %s1089_s8, 4  ;;  %s1025_s23 = int_to_ptr.vmem [resolvable:$false] %s1024_s23 }
  0x3c   : > { %s1026_s17 = scalar_lea.vmem %s1025_s23, 4096  ;;  %p1027_p5 = scmp.lt.s32.totalorder %s1297_s10, %s1025_s23 }
  0x3d   : > { %p1023_p4 = pneg %p1022_p13  ;;  %p1028_p7 = scmp.lt.s32.totalorder %s1026_s17, %s1020_s7 }
  0x3e   : > { %894 = vmatmul.mubr.msk.f32.gmra.mxu0 %vm202_vm0, %v195_v5 }
  0x3f   : > { %896 = vmatprep.mubr.msk.f32.mxu0 %vm202_vm0, %v196_v6  ;;  %p1029_p8 = por %p1028_p7, %p1027_p5 }
  0x41   : > { %p1030_p10 = pnand %p1029_p8, %p1023_p4 }
  0x42   : > { %897 = vmatmul.mubr.msk.f32.gmra.mxu0 %vm202_vm0, %v197_v7 }
  0x43   : > { %899 = vmatprep.mubr.msk.f32.mxu0 %vm202_vm0, %v198_v8 }
  0x46   : > { %900 = vmatmul.mubr.msk.f32.gmra.mxu0 %vm202_vm0, %v199_v9 }
  0x47   : > { %926 = vmatprep.mubr.msk.f32.mxu0 %vm202_vm0, %v332_v10 }
  0xfa   : > { %v892_v11 = vpop.f32.mrf.mxu0 }
  0xfb   : > { %902 = vmatprep.subr.mxu1 %v892_v11 }
  0xfc   : > { %v293_v12 = vpop.f32.mrf.mxu0  ;;  %903 = vmatpush3.msra.mxu1 %v892_v11 }
  0xfd   : > { %904 = vmatprep.subr.mxu1 %v293_v12 }
  0xfe   : > { %v895_v15 = vpop.f32.mrf.mxu0  ;;  %905 = vmatpush3.msra.mxu1 %v293_v12 }
  0xff   : > { %912 = vmatprep.subr.mxu1 %v895_v15  ;;  %907 = vmatmul.mubr.msk.f32.vlgmr.msra.gmra.mxu1 %vm202_vm0, %v333_v13 }
 0x100   : > { %v303_v16 = vpop.f32.mrf.mxu0  ;;  %913 = vmatpush3.msra.mxu1 %v895_v15  ;;  %909 = vmatprep.mubr.msk.f32.mxu1 %vm202_vm0, %v334_v14 }
 0x101   : > { %914 = vmatprep.subr.mxu1 %v303_v16 }
 0x102   : > { %v898_v18 = vpop.f32.mrf.mxu0  ;;  %915 = vmatpush3.msra.mxu1 %v303_v16 }
 0x103   : > { %922 = vmatprep.subr.mxu0 %v898_v18  ;;  %910 = vmatmul.mubr.msk.f32.gmra.mxu1 %vm202_vm0, %v335_v17 }
 0x104   : > { %v313_v19 = vpop.f32.mrf.mxu0  ;;  %923 = vmatpush3.msra.mxu0 %v898_v18  ;;  %916 = vmatprep.mubr.msk.f32.mxu1 %vm202_vm0, %v332_v10 }
 0x105   : > { %924 = vmatprep.subr.mxu0 %v313_v19 }
 0x106   : > { %925 = vmatpush3.msra.mxu0 %v313_v19  ;;  %v901_v20 = vpop.f32.mrf.mxu0 }
 0x107   : > { %932 = vmatprep.subr.mxu1 %v901_v20  ;;  %917 = vmatmul.mubr.msk.f32.vlgmr.msra.gmra.mxu1 %vm202_vm0, %v333_v13 }
 0x108   : > { %v323_v21 = vpop.f32.mrf.mxu0  ;;  %933 = vmatpush3.msra.mxu1 %v901_v20  ;;  %919 = vmatprep.mubr.msk.f32.mxu1 %vm202_vm0, %v334_v14 }
 0x109   : > { %934 = vmatprep.subr.mxu1 %v323_v21  ;;  %927 = vmatmul.mubr.msk.f32.vlgmr.msra.gmra.mxu0 %vm202_vm0, %v333_v13 }
 0x10a   : > { %935 = vmatpush3.msra.mxu1 %v323_v21  ;;  %929 = vmatprep.mubr.msk.f32.mxu0 %vm202_vm0, %v334_v14 }
 0x10b   : > { %920 = vmatmul.mubr.msk.f32.gmra.mxu1 %vm202_vm0, %v335_v17 }
 0x10c   : > { %936 = vmatprep.mubr.msk.f32.mxu1 %vm202_vm0, %v332_v10 }
 0x10d   : > { %930 = vmatmul.mubr.msk.f32.gmra.mxu0 %vm202_vm0, %v335_v17 }
 0x10f   : > { %937 = vmatmul.mubr.msk.f32.vlgmr.msra.gmra.mxu1 %vm202_vm0, %v333_v13 }
 0x110   : > { %939 = vmatprep.mubr.msk.f32.mxu1 %vm202_vm0, %v334_v14 }
 0x113   : > { %940 = vmatmul.mubr.msk.f32.gmra.mxu1 %vm202_vm0, %v335_v17 }
 0x1bf   : > { %v908_v22 = vpop.f32.mrf.mxu1 }
 0x1c0   : > { %435 = vst.msk [vmem:[%s1260_s30 + $0x8] sm:$0xff] %vm433_vm1, %v908_v22 }
 0x1c1   : > { %v414_v23 = vpop.f32.mrf.mxu1 }
 0x1c2   : > { %434 = vst.msk [vmem:[%s1260_s30] sm:$0xff] %vm433_vm1, %v414_v23 }
 0x1c3   : > { %v911_v24 = vpop.f32.mrf.mxu1 }
 0x1c4   : > { %437 = vst.msk [vmem:[%s1260_s30 + $0x18] sm:$0xff] %vm433_vm1, %v911_v24 }
 0x1c5   : > { %v424_v25 = vpop.f32.mrf.mxu1 }
 0x1c6   : > { %436 = vst.msk [vmem:[%s1260_s30 + $0x10] sm:$0xff] %vm433_vm1, %v424_v25 }
 0x1c7   : > { %v918_v26 = vpop.f32.mrf.mxu1 }
 0x1c8   : > { %823 = vst.msk [vmem:[%s1260_s30 + $0x28] sm:$0xff] %vm433_vm1, %v918_v26 }
 0x1c9   : > { %v504_v27 = vpop.f32.mrf.mxu1  ;;  %v928_v28 = vpop.f32.mrf.mxu0 }
 0x1ca   : > { %822 = vst.msk [vmem:[%s1260_s30 + $0x20] sm:$0xff] %vm433_vm1, %v504_v27  ;;  %831 = vst.msk [vmem:[%s1260_s30 + $0x48] sm:$0xff] %vm433_vm1, %v928_v28 }
 0x1cb   : > { %v921_v29 = vpop.f32.mrf.mxu1  ;;  %v594_v30 = vpop.f32.mrf.mxu0 }
 0x1cc   : > { %825 = vst.msk [vmem:[%s1260_s30 + $0x38] sm:$0xff] %vm433_vm1, %v921_v29  ;;  %830 = vst.msk [vmem:[%s1260_s30 + $0x40] sm:$0xff] %vm433_vm1, %v594_v30 }
 0x1cd   : > { %v514_v31 = vpop.f32.mrf.mxu1  ;;  %v931_v32 = vpop.f32.mrf.mxu0 }
 0x1ce   : > { %824 = vst.msk [vmem:[%s1260_s30 + $0x30] sm:$0xff] %vm433_vm1, %v514_v31  ;;  %833 = vst.msk [vmem:[%s1260_s30 + $0x58] sm:$0xff] %vm433_vm1, %v931_v32 }
 0x1cf   : > { %v938_v33 = vpop.f32.mrf.mxu1  ;;  %v604_v34 = vpop.f32.mrf.mxu0 }
 0x1d0   : > { %839 = vst.msk [vmem:[%s1260_s30 + $0x68] sm:$0xff] %vm433_vm1, %v938_v33  ;;  %832 = vst.msk [vmem:[%s1260_s30 + $0x50] sm:$0xff] %vm433_vm1, %v604_v34 }
 0x1d1   : > { %v684_v35 = vpop.f32.mrf.mxu1 }
 0x1d2   : > { %838 = vst.msk [vmem:[%s1260_s30 + $0x60] sm:$0xff] %vm433_vm1, %v684_v35 }
 0x1d3   : > { %v941_v36 = vpop.f32.mrf.mxu1 }
 0x1d4   : > { %841 = vst.msk [vmem:[%s1260_s30 + $0x78] sm:$0xff] %vm433_vm1, %v941_v36 }
 0x1d5   : > { %v694_v37 = vpop.f32.mrf.mxu1 }
 0x1d6   : > { %840 = vst.msk [vmem:[%s1260_s30 + $0x70] sm:$0xff] %vm433_vm1, %v694_v37 }
 0x1d7   : > { %1033 = shalt.err (!%p1030_p10)
}
 0x1d8   : > { %s1034_s19 = scalar_lea.hbm %s1295_s6, 2048  ;;  %s1038_s26 = scalar_lea.hbm %s1347_s3, 4096 }
 0x1d9   : > { %p1035_p0 = scmp.ne.s32.totalorder %s1295_s6, %s1034_s19  ;;  %p1039_p1 = scmp.lt.s32.totalorder %s1295_s6, %s1347_s3 }
 0x1da   : > { %p1040_p3 = scmp.lt.s32.totalorder %s1038_s26, %s1034_s19 }
 0x1db   : > { %p1036_p2 = pnand %p1035_p0, %p1356_p12 }
 0x1dc   : > { %p1041_p6 = por %p1040_p3, %p1039_p1 }
 0x1dd   : > { %p1037_p9 = pneg %p1036_p2 }
 0x1df   : > { %p1042_p11 = pnand %p1041_p6, %p1037_p9 }
 0x1e1   : > { %1045 = shalt.err (!%p1042_p11)
}
 0x1e2   : > { %s1090_s29 = smov 128   ;;  %s1091_s30 = smov 8  }
 0x1e3   : > { %944 = dma.vmem_to_hbm [thread:$0]  (%p1356_p12), %s1297_s10, 2048, %s1295_s6, %s709_s16, %s1090_s29, %s1090_s29, %s1091_s30  }
 0x1e4 PF: > { %s738_s9 = sand.u32 1, %s1072_s12   ;;  %p1357_p13 = scmp.ne.s32.totalorder %s1353_s25, 0 }
 0x1e5   : > { %p1358_p4 = scmp.ge.s32.totalorder %s1084_s15, 2  ;;  %s739_s11 = scalar_lea.sflag [#allocation4], %s738_s9 }
 0x1e7   : > { %p951_p5 = pnand %p1358_p4, %p1357_p13 }
 0x1e9   : > { %p952_p7 = pneg %p951_p5 }
 0x1eb   : > { %1067 = dma.done.wait (%p952_p7), %s739_s11, 2048  }
 0x1ec   : > { %1069 = vsyncadd (%p952_p7), %s739_s11, 4294965248  ;;  %p16_p8 = scmp.ge.s32.totalorder %s1137_s18, 4   ;;  %s1359_s12 = smov %s1076_s13 }
 0x1ed   : > { %s1360_s13 = smov %s1080_s14  ;;  %s1361_s14 = smov %s1149_s21 }
 0x1ee   : > { %s1362_s15 = smov %s1137_s18  ;;  %18 = sbr.rel (!%p16_p8) target bundleno = 5 (0x5), region = 80 }
 0x1f3   :  { %744 = vsyncpa [#allocation3], 1 }
 0x1f4   :  { %746 = vsyncpa [#allocation3 + $0x1], 1 }
 0x1f5   :  { %747 = vsyncpa [#allocation4], 1 }
 0x1f6   :  { %749 = vsyncpa [#allocation4 + $0x1], 1 }

</bundles_post_ra>
